<compile_context>
chip_gen: v5e
topology: v5e:2x2
jax: 0.10.0
libtpu: 0.0.40
codegen_flags: <defaults>
</compile_context>

<pallas_src>
import functools
import math

import jax
import jax.numpy as jnp
from jax.experimental import pallas as pl
from jax.experimental.pallas import tpu as pltpu

_LANE = 128
_SUBLANE = 8
_MIN_TILE = _SUBLANE * _LANE          # 1024 elems = one (8,128) f32 tile
_TARGET_BLOCK_ELEMS = 512 * 1024      # ~2 MiB per f32 buffer per grid step
_VMEM_LIMIT_BYTES = 32 * 1024 * 1024  # safe on v5e/v6e/v7x


# ---------------------------------------------------------------------------
# Single fused elementwise kernel (all options are compile-time constants)
# ---------------------------------------------------------------------------
def _add_quant_kernel(a1_ref, a2_ref, out_ref, *, thd_neg, thd_pos,
                      clip_before, inv_shift, out_scale):
    a1 = a1_ref[...]
    a2 = a2_ref[...]
    if clip_before:
        a1 = jnp.clip(a1, thd_neg, thd_pos)
        a2 = jnp.clip(a2, thd_neg, thd_pos)
    if inv_shift is not None:
        # floor_pass forward = floor(a2 / 2**k); inv_shift = 2**-k (exact f32)
        a2 = jnp.floor(a2 * inv_shift)
    x = jnp.clip(a1 + a2, thd_neg, thd_pos)
    if out_scale is not None:
        x = x * out_scale              # fused dequant (int_flag=False path)
    out_ref[...] = x


# ---------------------------------------------------------------------------
# Slab layout helpers + cached pallas_call builder
# ---------------------------------------------------------------------------
def _slab_shape(n):
    """Pick a lane-dense 2D slab (rows, cols): cols a wide multiple of 128,
    rows a multiple of 8.  Returns None if n is not a multiple of 8*128."""
    for c in (4096, 2048, 1024, 512, 256, 128):
        if n % (_SUBLANE * c) == 0:
            return n // c, c
    return None


@functools.lru_cache(maxsize=None)
def _build_call(rows, cols, block_rows, dtype_name, thd_neg, thd_pos,
                clip_before, inv_shift, out_scale):
    dtype = jnp.dtype(dtype_name)
    kern = functools.partial(
        _add_quant_kernel,
        thd_neg=thd_neg, thd_pos=thd_pos, clip_before=clip_before,
        inv_shift=inv_shift, out_scale=out_scale)
    return pl.pallas_call(
        kern,
        out_shape=jax.ShapeDtypeStruct((rows, cols), dtype),
        grid=(pl.cdiv(rows, block_rows),),
        in_specs=[pl.BlockSpec((block_rows, cols), lambda i: (i, 0)),
                  pl.BlockSpec((block_rows, cols), lambda i: (i, 0))],
        out_specs=pl.BlockSpec((block_rows, cols), lambda i: (i, 0)),
        compiler_params=pltpu.CompilerParams(
            dimension_semantics=("parallel",),
            vmem_limit_bytes=_VMEM_LIMIT_BYTES),
    )


def _run_elementwise(a1, a2, *, thd_neg, thd_pos, clip_before,
                     inv_shift=None, out_scale=None):
    shape = a1.shape
    n = a1.size
    flat1 = a1.reshape(-1)
    flat2 = a2.reshape(-1)

    slab = _slab_shape(n)
    padded = False
    if slab is None:
        # Ragged total size: pad only up to the next (8,128) tile.
        # TODO(synk): this fallback copies the flat array once (XLA pad);
        # typical NCHW activation sizes are multiples of 1024 and never hit it.
        pad = (-n) % _MIN_TILE
        flat1 = jnp.pad(flat1, (0, pad))
        flat2 = jnp.pad(flat2, (0, pad))
        slab = _slab_shape(n + pad)
        padded = True

    rows, cols = slab
    block_rows = max(_SUBLANE, min(rows, _TARGET_BLOCK_ELEMS // cols))
    block_rows = (block_rows // _SUBLANE) * _SUBLANE

    call = _build_call(rows, cols, block_rows, jnp.dtype(flat1.dtype).name,
                       float(thd_neg), float(thd_pos), bool(clip_before),
                       None if inv_shift is None else float(inv_shift),
                       None if out_scale is None else float(out_scale))
    out = call(flat1.reshape(rows, cols), flat2.reshape(rows, cols))

    out = out.reshape(-1)
    if padded:
        out = out[:n]
    return out.reshape(shape)


# ---------------------------------------------------------------------------
# Module-equivalent wrapper
# ---------------------------------------------------------------------------
def _twn_n(x):
    # TODO(synk): twn_n is not defined in the provided source; assumed to be
    # round(log2(x)) (power-of-two shift count), the usual A111 convention.
    return int(round(math.log2(float(x))))


class AddQuant:
    def __init__(self, *, thd_neg, thd_pos, bit=9, all_positive=False,
                 symmetric=True, quant_method=0, shift=0, clip_before=False):
        self.bit = bit
        self.thd_neg = thd_neg
        self.thd_pos = thd_pos
        self.quant_method = quant_method
        self.shift = shift
        self.int_flag = True
        self.clip_before = clip_before
        self.s1 = jnp.array(1.0, jnp.float32)   # buffers (kept for parity)
        self.s2 = jnp.array(1.0, jnp.float32)

    def __call__(self, input1, input2):
        if not (isinstance(input1, tuple) and isinstance(input2, tuple)):
            return input1 + input2          # non-quantized glue path
        if input1[1] == 0.0 or input2[1] == 0.0:
            raise ValueError('add_quant module need quantized input. ')
        a1_int, s1 = input1
        a2_int, s2 = input2
        # NOTE: like the PyTorch reference, the scale branches below require
        # s1/s2 to be concrete Python scalars.
        self.s1 = jnp.asarray(s1, jnp.float32)
        self.s2 = jnp.asarray(s2, jnp.float32)

        if self.quant_method == 0:
            if self.shift == 0:
                s = s1 if s1 > s2 else s2
                scale = None if self.int_flag else float(s)
                x = _run_elementwise(a1_int, a2_int,
                                     thd_neg=self.thd_neg, thd_pos=self.thd_pos,
                                     clip_before=self.clip_before,
                                     inv_shift=None, out_scale=scale)
                return (x, s) if self.int_flag else x
            elif self.shift == 1:
                if s2 > s1:
                    a1_int, a2_int = a2_int, a1_int
                    s1, s2 = s2, s1
                k = _twn_n(s1 / s2)
                inv_shift = float(2.0 ** (-k))
                scale = None if self.int_flag else float(s1)
                x = _run_elementwise(a1_int, a2_int,
                                     thd_neg=self.thd_neg, thd_pos=self.thd_pos,
                                     clip_before=self.clip_before,
                                     inv_shift=inv_shift, out_scale=scale)
                return (x, s1) if self.int_flag else x
        raise NotImplementedError(
            "quant_method != 0 not covered by reference forward")


# ---------------------------------------------------------------------------
# Demo / self-test
# ---------------------------------------------------------------------------
if __name__ == "__main__":
    key = jax.random.PRNGKey(0)
    k1, k2, k3, k4 = jax.random.split(key, 4)
    shape = (2, 4, 16, 16)   # NCHW
    thd_neg, thd_pos = -256, 255  # 9-bit signed range

    # "integer" activations stored as float32, as in the torch pipeline
    a1 = jax.random.randint(k1, shape, -300, 300).astype(jnp.float32)
    a2 = jax.random.randint(k2, shape, -300, 300).astype(jnp.float32)
    s1, s2 = 0.5, 0.125

    # shift=0 path
    mod0 = AddQuant(thd_neg=thd_neg, thd_pos=thd_pos, shift=0, clip_before=False)
    x0, scale0 = mod0((a1, s1), (a2, s2))
    jax.block_until_ready(x0)
    ref0 = jnp.clip(a1 + a2, thd_neg, thd_pos)
    assert x0.shape == shape and x0.dtype == jnp.float32
    assert scale0 == max(s1, s2)
    assert jnp.allclose(x0, ref0)

    # shift=1 path (with clip_before), scales swapped to hit reorder branch
    mod1 = AddQuant(thd_neg=thd_neg, thd_pos=thd_pos, shift=1, clip_before=True)
    x1, scale1 = mod1((a2, s2), (a1, s1))
    jax.block_until_ready(x1)
    c1 = jnp.clip(a1, thd_neg, thd_pos)
    c2 = jnp.clip(a2, thd_neg, thd_pos)
    k = int(round(math.log2(s1 / s2)))     # s1 > s2 after reorder
    ref1 = jnp.clip(c1 + jnp.floor(c2 / (2.0 ** k)), thd_neg, thd_pos)
    assert scale1 == s1
    assert jnp.allclose(x1, ref1)

    # ragged total size exercises the tail-pad fallback
    rshape = (3, 5, 7)
    b1 = jax.random.randint(k3, rshape, -300, 300).astype(jnp.float32)
    b2 = jax.random.randint(k4, rshape, -300, 300).astype(jnp.float32)
    xr, scaler = mod0((b1, s1), (b2, s2))
    jax.block_until_ready(xr)
    refr = jnp.clip(b1 + b2, thd_neg, thd_pos)
    assert xr.shape == rshape and jnp.allclose(xr, refr)

    # int_flag=False path: dequant scale fused into the kernel
    mod2 = AddQuant(thd_neg=thd_neg, thd_pos=thd_pos, shift=0)
    mod2.int_flag = False
    xf = mod2((a1, s1), (a2, s2))
    jax.block_until_ready(xf)
    assert jnp.allclose(xf, ref0 * max(s1, s2))

    # non-tuple fallthrough
    plain = mod0(a1, a2)
    jax.block_until_ready(plain)
    assert jnp.allclose(plain, a1 + a2)

    print("KERNEL_OK")
</pallas_src>

<mosaic_0001>
module attributes {stable_mosaic.version = 11 : i64} {
  func.func @_add_quant_kernel(%arg0: i32, %arg1: memref<8x256xf32, #tpu.memory_space<vmem>>, %arg2: memref<8x256xf32, #tpu.memory_space<vmem>>, %arg3: memref<8x256xf32, #tpu.memory_space<vmem>>) attributes {dimension_semantics = [#tpu.dimension_semantics<parallel>], iteration_bounds = array<i64: 1>, scalar_prefetch = 0 : i64, scratch_operands = 0 : i64, tpu.core_type = #tpu.core_type<tc>, window_params = [{transform_indices = @transform_0, window_bounds = array<i64: 8, 256>}, {transform_indices = @transform_1, window_bounds = array<i64: 8, 256>}, {transform_indices = @transform_2, window_bounds = array<i64: 8, 256>}]} {
    %c0 = arith.constant 0 : index
    %c0_0 = arith.constant 0 : index
    %0 = vector.load %arg1[%c0, %c0_0] : memref<8x256xf32, #tpu.memory_space<vmem>>, vector<8x256xf32>
    %c0_1 = arith.constant 0 : index
    %c0_2 = arith.constant 0 : index
    %1 = vector.load %arg2[%c0_1, %c0_2] : memref<8x256xf32, #tpu.memory_space<vmem>>, vector<8x256xf32>
    %2 = arith.addf %0, %1 : vector<8x256xf32>
    %cst = arith.constant -2.560000e+02 : f32
    %cst_3 = arith.constant 2.550000e+02 : f32
    %3 = vector.broadcast %cst : f32 to vector<8x256xf32>
    %4 = arith.maximumf %3, %2 : vector<8x256xf32>
    %5 = vector.broadcast %cst_3 : f32 to vector<8x256xf32>
    %6 = arith.minimumf %5, %4 : vector<8x256xf32>
    %c0_4 = arith.constant 0 : index
    %c0_5 = arith.constant 0 : index
    %7 = vector.load %arg3[%c0_4, %c0_5] : memref<8x256xf32, #tpu.memory_space<vmem>>, vector<8x256xf32>
    tpu.vector_store %arg3[%c0_4, %c0_5], %6 {strides = array<i32>} : memref<8x256xf32, #tpu.memory_space<vmem>>, vector<8x256xf32>,
    return
  }
  func.func @transform_0(%arg0: i32) -> (i32, i32) {
    %c0_i32 = arith.constant 0 : i32
    %c0_i32_0 = arith.constant 0 : i32
    return %arg0, %c0_i32 : i32, i32
  }
  func.func @transform_1(%arg0: i32) -> (i32, i32) {
    %c0_i32 = arith.constant 0 : i32
    %c0_i32_0 = arith.constant 0 : i32
    return %arg0, %c0_i32 : i32, i32
  }
  func.func @transform_2(%arg0: i32) -> (i32, i32) {
    %c0_i32 = arith.constant 0 : i32
    %c0_i32_0 = arith.constant 0 : i32
    return %arg0, %c0_i32 : i32, i32
  }
}

</mosaic_0001>

<bundles_post_ra>
// kernel: tpu_custom_call.1
= control target key start
LH: loop header
LB: loop body
LE: loop exit
PB: predicated region body
PF: predicated region fallthrough
CT: control target
= control target key end

     0   :  { %7 = vsyncpa [#allocation3], 0  ;;  %s178_s0 = inlined_call_operand.hbm [shape: f32[8,256], index: 0, kind: input, shape index: {}]   ;;  %s179_s1 = inlined_call_operand.hbm [shape: f32[8,256], index: 1, kind: input, shape index: {}]   ;;  %s180_s2 = inlined_call_operand.hbm [shape: f32[8,256], index: 2, kind: output, shape index: {}]  }
   0x1   :  { %8 = vsyncpa [#allocation6], 0 }
   0x2   :  { %9 = vsyncpa [#allocation4], 0  ;;  %s15_s11 = sshll.u32 %s178_s0, 4  ;;  %s151_s12 = smov [#allocation2]   ;;  %s16_s11 = int_to_ptr.hbm [resolvable:$true] %s15_s11 }
   0x3   :  { %s17_s13 = sshll.u32 %s151_s12, 4  ;;  %s26_s16 = sshll.u32 %s179_s1, 4  ;;  %s18_s13 = int_to_ptr.vmem [resolvable:$true] %s17_s13  ;;  %s27_s16 = int_to_ptr.hbm [resolvable:$true] %s26_s16 }
   0x4   :  { %20 = dma.hbm_to_vmem [thread:$0]  %s16_s11, 256, %s18_s13, [#allocation3]  }
   0x5   :  { %s152_s17 = smov [#allocation5]  }
   0x6   :  { %s28_s18 = sshll.u32 %s152_s17, 4  ;;  %s29_s18 = int_to_ptr.vmem [resolvable:$true] %s28_s18 }
   0x7   :  { %31 = dma.hbm_to_vmem [thread:$0]  %s27_s16, 256, %s29_s18, [#allocation6]  }
   0x8   :  { %145 = dma.done.wait [#allocation3], 256  }
   0x9   :  { %146 = vsyncadd [#allocation3], 4294967040 }
   0xa   :  { %147 = dma.done.wait [#allocation6], 256  }
   0xb   :  { %148 = vsyncadd [#allocation6], 4294967040  ;;  %v40_v0 = vld [vmem:[#allocation2] sm:$0xff]  ;;  %v42_v1 = vld [vmem:[#allocation5] sm:$0xff]  ;;  %s153_s0 = smov [#allocation7]   ;;  %s59_s21 = sshll.u32 %s180_s2, 4  ;;  %s60_s21 = int_to_ptr.hbm [resolvable:$true] %s59_s21 }
   0xc   :  { %v41_v2 = vld [vmem:[#allocation2 + $0x8] sm:$0xff]  ;;  %v44_v3 = vadd.f32 %v42_v1, %v40_v0  ;;  %v43_v4 = vld [vmem:[#allocation5 + $0x8] sm:$0xff]  ;;  %s57_s19 = sshll.u32 %s153_s0, 4  ;;  %s58_s19 = int_to_ptr.vmem [resolvable:$true] %s57_s19 }
   0xd   :  { %v45_v5 = vadd.f32 %v43_v4, %v41_v2 }
   0xe   :  { %v46_v6 = vmax.f32 %v44_v3, -256.0 }
   0xf   :  { %v47_v7 = vmax.f32 %v45_v5, -256.0 }
  0x10   :  { %v48_v8 = vmin.f32 %v46_v6, 255.0 }
  0x11   :  { %v49_v9 = vmin.f32 %v47_v7, 255.0 }
  0x12   :  { %50 = vst [vmem:[#allocation7] sm:$0xff] %v48_v8 }
  0x13   :  { %51 = vst [vmem:[#allocation7 + $0x8] sm:$0xff] %v49_v9 }
  0x14   :  { %62 = dma.vmem_to_hbm [thread:$0]  %s58_s19, 256, %s60_s21, [#allocation4]  }
  0x15   :  { %149 = dma.done.wait [#allocation4], 256  }
  0x16   :  { %150 = vsyncadd [#allocation4], 4294967040 }
  0x17   :  { %67 = vsyncpa [#allocation3], 1 }
  0x18   :  { %68 = vsyncpa [#allocation6], 1 }
  0x19   :  { %69 = vsyncpa [#allocation4], 1 }

</bundles_post_ra>
